<compile_context>
chip_gen: v7x
topology: tpu7x:2x2x1
jax: 0.10.0
libtpu: 0.0.40
codegen_flags: <defaults>
</compile_context>

<pallas_src>
import jax
import jax.numpy as jnp
from jax.experimental import pallas as pl
from jax.experimental.pallas import tpu as pltpu

LANE = 128
SUBLANE = 8
TB_MAX = 1024  # batch block rows; sized against v7x's 64 MiB VMEM, fine everywhere


def _round_up(x, m):
    return (x + m - 1) // m * m


def actor_kernel(x_ref, w1_ref, b1_ref, w2_ref, b2_ref, w3_ref, b3_ref, o_ref):
    # Fused 3-layer MLP for one batch block.
    # Matmuls: bf16 operands -> MXU-native, f32 accumulation.
    # Elementwise (bias add, relu, tanh): f32 on VPU/EUP.
    x = x_ref[...].astype(jnp.bfloat16)
    h1 = jnp.dot(x, w1_ref[...], preferred_element_type=jnp.float32) + b1_ref[...]
    h1 = jnp.maximum(h1, 0.0)
    h2 = jnp.dot(h1.astype(jnp.bfloat16), w2_ref[...],
                 preferred_element_type=jnp.float32) + b2_ref[...]
    h2 = jnp.maximum(h2, 0.0)
    h3 = jnp.dot(h2.astype(jnp.bfloat16), w3_ref[...],
                 preferred_element_type=jnp.float32) + b3_ref[...]
    o_ref[...] = jnp.tanh(h3)


def actor_forward(state, params, block_b=TB_MAX):
    """state: (B, state_dim) f32.
    params: w* are (in, out) bf16 (pre-transposed from PyTorch's (out, in)),
            b* are (1, out) f32."""
    w1, b1 = params["w1"], params["b1"]
    w2, b2 = params["w2"], params["b2"]
    w3, b3 = params["w3"], params["b3"]

    B, state_dim = state.shape
    action_dim = w3.shape[1]

    # Lane-dense output: pad the final layer to a multiple of 128 output lanes so
    # the writeback uses full, unmasked vector stores; wrapper slices it back.
    act_pad = _round_up(action_dim, LANE)
    if act_pad != action_dim:
        w3 = jnp.pad(w3, ((0, 0), (0, act_pad - action_dim)))
        b3 = jnp.pad(b3, ((0, 0), (0, act_pad - action_dim)))

    # Batch blocking: tb is a multiple of 8 (sublane) and capped for VMEM.
    tb = min(block_b, _round_up(B, SUBLANE))
    padded_B = _round_up(B, tb)
    if padded_B != B:
        state = jnp.pad(state, ((0, padded_B - B), (0, 0)))
    grid = (padded_B // tb,)

    out = pl.pallas_call(
        actor_kernel,
        out_shape=jax.ShapeDtypeStruct((padded_B, act_pad), jnp.float32),
        grid=grid,
        in_specs=[
            # State: batch-blocked, pipelined across the grid.
            pl.BlockSpec((tb, state_dim), lambda i: (i, 0)),
            # Weights / biases: full arrays, constant index -> DMA'd once, resident.
            pl.BlockSpec(w1.shape, lambda i: (0, 0)),
            pl.BlockSpec(b1.shape, lambda i: (0, 0)),
            pl.BlockSpec(w2.shape, lambda i: (0, 0)),
            pl.BlockSpec(b2.shape, lambda i: (0, 0)),
            pl.BlockSpec(w3.shape, lambda i: (0, 0)),
            pl.BlockSpec(b3.shape, lambda i: (0, 0)),
        ],
        out_specs=pl.BlockSpec((tb, act_pad), lambda i: (i, 0)),
        compiler_params=pltpu.CompilerParams(
            dimension_semantics=("parallel",),       # dual-TC sharding on v7x
            vmem_limit_bytes=32 * 1024 * 1024,       # headroom under v7x's 64 MiB
        ),
    )(state, w1, b1, w2, b2, w3, b3)

    return out[:B, :action_dim]


def orthogonal(key, out_dim, in_dim):
    """Deterministic orthogonal init matching torch.nn.init.orthogonal_ semantics
    (rows orthonormal if out_dim <= in_dim, columns otherwise)."""
    rows, cols = out_dim, in_dim
    transpose = rows < cols
    a = jax.random.normal(key, (max(rows, cols), min(rows, cols)), dtype=jnp.float32)
    q, r = jnp.linalg.qr(a)
    # Sign correction for a unique decomposition (avoid sign(0) == 0).
    d = jnp.diagonal(r)
    q = q * jnp.where(d >= 0, 1.0, -1.0)[None, :]
    w = q.T if transpose else q
    return w[:rows, :cols]


def init_actor_params(key, state_dim, action_dim, hidden_dim=(30, 30)):
    k1, k2, k3, kb1, kb2, kb3 = jax.random.split(key, 6)
    h0, h1 = hidden_dim
    # PyTorch Linear stores weight as (out, in); pre-transpose to (in, out).
    # Weights in bf16 for MXU-native throughput; biases stay f32.
    w1 = orthogonal(k1, h0, state_dim).T.astype(jnp.bfloat16)
    w2 = orthogonal(k2, h1, h0).T.astype(jnp.bfloat16)
    w3 = orthogonal(k3, action_dim, h1).T.astype(jnp.bfloat16)
    # Default PyTorch Linear bias init: U(-1/sqrt(fan_in), 1/sqrt(fan_in)).
    b1 = jax.random.uniform(kb1, (1, h0), jnp.float32,
                            -1.0 / jnp.sqrt(state_dim), 1.0 / jnp.sqrt(state_dim))
    b2 = jax.random.uniform(kb2, (1, h1), jnp.float32,
                            -1.0 / jnp.sqrt(h0), 1.0 / jnp.sqrt(h0))
    b3 = jax.random.uniform(kb3, (1, action_dim), jnp.float32,
                            -1.0 / jnp.sqrt(h1), 1.0 / jnp.sqrt(h1))
    return {"w1": w1, "b1": b1, "w2": w2, "b2": b2, "w3": w3, "b3": b3}


def actor_ref(state, params):
    """Pure-JAX reference mirroring the kernel's bf16-in / f32-accumulate math."""
    def dense(x, w, b):
        return jnp.dot(x.astype(jnp.bfloat16), w,
                       preferred_element_type=jnp.float32) + b
    h1 = jnp.maximum(dense(state, params["w1"], params["b1"]), 0.0)
    h2 = jnp.maximum(dense(h1, params["w2"], params["b2"]), 0.0)
    return jnp.tanh(dense(h2, params["w3"], params["b3"]))


if __name__ == "__main__":
    state_dim, action_dim = 17, 6
    batch = 4

    key = jax.random.PRNGKey(0)
    kp, kx = jax.random.split(key)
    params = init_actor_params(kp, state_dim, action_dim, hidden_dim=(30, 30))
    state = jax.random.normal(kx, (batch, state_dim), dtype=jnp.float32)

    out = actor_forward(state, params)
    out = jax.block_until_ready(out)

    ref = actor_ref(state, params)
    assert out.shape == (batch, action_dim)
    assert jnp.allclose(out, ref, atol=1e-3, rtol=1e-3), "mismatch vs JAX reference"

    print("KERNEL_OK")
</pallas_src>

<mosaic_0001>
module attributes {stable_mosaic.version = 11 : i64} {
  func.func @actor_kernel(%arg0: i32, %arg1: memref<8x17xf32, #tpu.memory_space<vmem>>, %arg2: memref<17x30xbf16, #tpu.memory_space<vmem>>, %arg3: memref<1x30xf32, #tpu.memory_space<vmem>>, %arg4: memref<30x30xbf16, #tpu.memory_space<vmem>>, %arg5: memref<1x30xf32, #tpu.memory_space<vmem>>, %arg6: memref<30x128xbf16, #tpu.memory_space<vmem>>, %arg7: memref<1x128xf32, #tpu.memory_space<vmem>>, %arg8: memref<8x128xf32, #tpu.memory_space<vmem>>) attributes {dimension_semantics = [#tpu.dimension_semantics<parallel>], iteration_bounds = array<i64: 1>, scalar_prefetch = 0 : i64, scratch_operands = 0 : i64, tpu.core_type = #tpu.core_type<tc>, window_params = [{transform_indices = @transform_0, window_bounds = array<i64: 8, 17>}, {pipeline_mode = #tpu.pipeline_mode<synchronous>, transform_indices = @transform_1, window_bounds = array<i64: 17, 30>}, {pipeline_mode = #tpu.pipeline_mode<synchronous>, transform_indices = @transform_2, window_bounds = array<i64: 1, 30>}, {pipeline_mode = #tpu.pipeline_mode<synchronous>, transform_indices = @transform_3, window_bounds = array<i64: 30, 30>}, {pipeline_mode = #tpu.pipeline_mode<synchronous>, transform_indices = @transform_4, window_bounds = array<i64: 1, 30>}, {pipeline_mode = #tpu.pipeline_mode<synchronous>, transform_indices = @transform_5, window_bounds = array<i64: 30, 128>}, {pipeline_mode = #tpu.pipeline_mode<synchronous>, transform_indices = @transform_6, window_bounds = array<i64: 1, 128>}, {transform_indices = @transform_7, window_bounds = array<i64: 8, 128>}]} {
    %c0 = arith.constant 0 : index
    %c0_0 = arith.constant 0 : index
    %0 = vector.load %arg1[%c0, %c0_0] : memref<8x17xf32, #tpu.memory_space<vmem>>, vector<8x17xf32>
    %1 = arith.truncf %0 : vector<8x17xf32> to vector<8x17xbf16>
    %c0_1 = arith.constant 0 : index
    %c0_2 = arith.constant 0 : index
    %2 = vector.load %arg2[%c0_1, %c0_2] : memref<17x30xbf16, #tpu.memory_space<vmem>>, vector<17x30xbf16>
    %cst = arith.constant dense<0.000000e+00> : vector<8x30xf32>
    %3 = tpu.matmul %1, %2, %cst {dimension_numbers = #tpu.dot_dimension_numbers<[1], [0], [0], [1], [0, 0, 1, 1], [], []>} : vector<8x17xbf16>, vector<17x30xbf16>, vector<8x30xf32> -> vector<8x30xf32>
    %c0_3 = arith.constant 0 : index
    %c0_4 = arith.constant 0 : index
    %4 = vector.load %arg3[%c0_3, %c0_4] : memref<1x30xf32, #tpu.memory_space<vmem>>, vector<1x30xf32>
    %5 = vector.broadcast %4 : vector<1x30xf32> to vector<8x30xf32>
    %6 = arith.addf %3, %5 : vector<8x30xf32>
    %cst_5 = arith.constant 0.000000e+00 : f32
    %7 = vector.broadcast %cst_5 : f32 to vector<8x30xf32>
    %8 = arith.maximumf %6, %7 : vector<8x30xf32>
    %9 = arith.truncf %8 : vector<8x30xf32> to vector<8x30xbf16>
    %c0_6 = arith.constant 0 : index
    %c0_7 = arith.constant 0 : index
    %10 = vector.load %arg4[%c0_6, %c0_7] : memref<30x30xbf16, #tpu.memory_space<vmem>>, vector<30x30xbf16>
    %cst_8 = arith.constant dense<0.000000e+00> : vector<8x30xf32>
    %11 = tpu.matmul %9, %10, %cst_8 {dimension_numbers = #tpu.dot_dimension_numbers<[1], [0], [0], [1], [0, 0, 1, 1], [], []>} : vector<8x30xbf16>, vector<30x30xbf16>, vector<8x30xf32> -> vector<8x30xf32>
    %c0_9 = arith.constant 0 : index
    %c0_10 = arith.constant 0 : index
    %12 = vector.load %arg5[%c0_9, %c0_10] : memref<1x30xf32, #tpu.memory_space<vmem>>, vector<1x30xf32>
    %13 = vector.broadcast %12 : vector<1x30xf32> to vector<8x30xf32>
    %14 = arith.addf %11, %13 : vector<8x30xf32>
    %cst_11 = arith.constant 0.000000e+00 : f32
    %15 = vector.broadcast %cst_11 : f32 to vector<8x30xf32>
    %16 = arith.maximumf %14, %15 : vector<8x30xf32>
    %17 = arith.truncf %16 : vector<8x30xf32> to vector<8x30xbf16>
    %c0_12 = arith.constant 0 : index
    %c0_13 = arith.constant 0 : index
    %18 = vector.load %arg6[%c0_12, %c0_13] : memref<30x128xbf16, #tpu.memory_space<vmem>>, vector<30x128xbf16>
    %cst_14 = arith.constant dense<0.000000e+00> : vector<8x128xf32>
    %19 = tpu.matmul %17, %18, %cst_14 {dimension_numbers = #tpu.dot_dimension_numbers<[1], [0], [0], [1], [0, 0, 1, 1], [], []>} : vector<8x30xbf16>, vector<30x128xbf16>, vector<8x128xf32> -> vector<8x128xf32>
    %c0_15 = arith.constant 0 : index
    %c0_16 = arith.constant 0 : index
    %20 = vector.load %arg7[%c0_15, %c0_16] : memref<1x128xf32, #tpu.memory_space<vmem>>, vector<1x128xf32>
    %21 = vector.broadcast %20 : vector<1x128xf32> to vector<8x128xf32>
    %22 = arith.addf %19, %21 : vector<8x128xf32>
    %23 = math.tanh %22 : vector<8x128xf32>
    %c0_17 = arith.constant 0 : index
    %c0_18 = arith.constant 0 : index
    %24 = vector.load %arg8[%c0_17, %c0_18] : memref<8x128xf32, #tpu.memory_space<vmem>>, vector<8x128xf32>
    tpu.vector_store %arg8[%c0_17, %c0_18], %23 {strides = array<i32>} : memref<8x128xf32, #tpu.memory_space<vmem>>, vector<8x128xf32>,
    return
  }
  func.func @transform_0(%arg0: i32) -> (i32, i32) {
    %c0_i32 = arith.constant 0 : i32
    %c0_i32_0 = arith.constant 0 : i32
    return %arg0, %c0_i32 : i32, i32
  }
  func.func @transform_1(%arg0: i32) -> (i32, i32) {
    %c0_i32 = arith.constant 0 : i32
    %c0_i32_0 = arith.constant 0 : i32
    %c0_i32_1 = arith.constant 0 : i32
    return %c0_i32, %c0_i32_0 : i32, i32
  }
  func.func @transform_2(%arg0: i32) -> (i32, i32) {
    %c0_i32 = arith.constant 0 : i32
    %c0_i32_0 = arith.constant 0 : i32
    %c0_i32_1 = arith.constant 0 : i32
    return %c0_i32, %c0_i32_0 : i32, i32
  }
  func.func @transform_3(%arg0: i32) -> (i32, i32) {
    %c0_i32 = arith.constant 0 : i32
    %c0_i32_0 = arith.constant 0 : i32
    %c0_i32_1 = arith.constant 0 : i32
    return %c0_i32, %c0_i32_0 : i32, i32
  }
  func.func @transform_4(%arg0: i32) -> (i32, i32) {
    %c0_i32 = arith.constant 0 : i32
    %c0_i32_0 = arith.constant 0 : i32
    %c0_i32_1 = arith.constant 0 : i32
    return %c0_i32, %c0_i32_0 : i32, i32
  }
  func.func @transform_5(%arg0: i32) -> (i32, i32) {
    %c0_i32 = arith.constant 0 : i32
    %c0_i32_0 = arith.constant 0 : i32
    %c0_i32_1 = arith.constant 0 : i32
    return %c0_i32, %c0_i32_0 : i32, i32
  }
  func.func @transform_6(%arg0: i32) -> (i32, i32) {
    %c0_i32 = arith.constant 0 : i32
    %c0_i32_0 = arith.constant 0 : i32
    %c0_i32_1 = arith.constant 0 : i32
    return %c0_i32, %c0_i32_0 : i32, i32
  }
  func.func @transform_7(%arg0: i32) -> (i32, i32) {
    %c0_i32 = arith.constant 0 : i32
    %c0_i32_0 = arith.constant 0 : i32
    return %arg0, %c0_i32 : i32, i32
  }
}

</mosaic_0001>

<bundles_post_ra>
// kernel: tpu_custom_call.1
= control target key start
LH: loop header
LB: loop body
LE: loop exit
PB: predicated region body
PF: predicated region fallthrough
CT: control target
= control target key end

     0   :  { %12 = vsyncpa [#allocation3], 0  ;;  %s577_s0 = inlined_call_operand.hbm [shape: f32[8,17], index: 0, kind: input, shape index: {}]   ;;  %s578_s1 = inlined_call_operand.hbm [shape: bf16[17,30], index: 1, kind: input, shape index: {}]   ;;  %s579_s2 = inlined_call_operand.vmem [shape: f32[1,30], index: 2, kind: input, shape index: {}]   ;;  %s580_s3 = inlined_call_operand.hbm [shape: bf16[30,30], index: 3, kind: input, shape index: {}]   ;;  %s581_s4 = inlined_call_operand.vmem [shape: f32[1,30], index: 4, kind: input, shape index: {}]   ;;  %s582_s5 = inlined_call_operand.vmem [shape: bf16[30,128], index: 5, kind: input, shape index: {}]   ;;  %s583_s6 = inlined_call_operand.vmem [shape: f32[1,128], index: 6, kind: input, shape index: {}]   ;;  %s584_s7 = inlined_call_operand.hbm [shape: f32[8,128], index: 7, kind: output, shape index: {}]  }
   0x1   :  { %13 = vsyncpa [#allocation6], 0 }
   0x2   :  { %14 = vsyncpa [#allocation4], 0  ;;  %s454_s24 = smov [#allocation5]   ;;  %s360_s28 = scalar_lea.hbm %s578_s1, 192 }
   0x3   :  { %s30_s25 = sshll.u32 %s454_s24, 4  ;;  %p361_p0 = scmp.ne.s32.totalorder %s578_s1, %s360_s28  ;;  %s31_s25 = int_to_ptr.vmem [resolvable:$true] %s30_s25 }
   0x4   :  { %p364_p1 = scmp.lt.u32.totalorder %s360_s28, %s578_s1 }
   0x6   :  { %p366_p2 = pnand %p364_p1, %p361_p0 }
   0x8   :  { %369 = shalt.err (!%p366_p2)
}
   0x9   :  { %s370_s10 = scalar_lea.vmem %s31_s25, 192  ;;  %p375_p4 = scmp.lt.s32.totalorder %s31_s25, %s31_s25 }
   0xa   :  { %p371_p3 = scmp.ne.s32.totalorder %s31_s25, %s370_s10  ;;  %p376_p5 = scmp.lt.s32.totalorder %s370_s10, %s370_s10 }
   0xc   :  { %p377_p6 = por %p376_p5, %p375_p4 }
   0xe   :  { %p378_p7 = pnand %p377_p6, %p371_p3 }
  0x10   :  { %381 = shalt.err (!%p378_p7)
}
  0x11   :  { %s455_s11 = smov 64   ;;  %s456_s12 = smov 4  }
  0x12   :  { %36 = dma.hbm_to_vmem [thread:$0]  %s578_s1, 192, %s31_s25, [#allocation6], %s455_s11, %s455_s11, %s456_s12  }
  0x13   :  { %s457_s15 = smov [#allocation2]   ;;  %s458_s17 = smov [#allocation7]  }
  0x14   :  { %s21_s16 = sshll.u32 %s457_s15, 4  ;;  %s44_s18 = sshll.u32 %s458_s17, 4  ;;  %s22_s16 = int_to_ptr.vmem [resolvable:$true] %s21_s16  ;;  %s45_s18 = int_to_ptr.vmem [resolvable:$true] %s44_s18 }
  0x15   :  { %s382_s21 = scalar_lea.hbm %s577_s0, 128 }
  0x16   :  { %p383_p8 = scmp.ne.s32.totalorder %s577_s0, %s382_s21  ;;  %p386_p9 = scmp.lt.u32.totalorder %s382_s21, %s577_s0 }
  0x18   :  { %p388_p10 = pnand %p386_p9, %p383_p8 }
  0x1a   :  { %391 = shalt.err (!%p388_p10)
}
  0x1b   :  { %s392_s1 = scalar_lea.vmem %s22_s16, 128  ;;  %p397_p12 = scmp.lt.s32.totalorder %s22_s16, %s22_s16 }
  0x1c   :  { %p393_p11 = scmp.ne.s32.totalorder %s22_s16, %s392_s1  ;;  %p398_p13 = scmp.lt.s32.totalorder %s392_s1, %s392_s1 }
  0x1e   :  { %p399_p0 = por %p398_p13, %p397_p12 }
  0x20   :  { %p400_p1 = pnand %p399_p0, %p393_p11 }
  0x22   :  { %403 = shalt.err (!%p400_p1)
}
  0x23   :  { %24 = dma.hbm_to_vmem [thread:$0]  %s577_s0, 128, %s22_s16, [#allocation3]  }
  0x24   :  { %s404_s30 = scalar_lea.hbm %s580_s3, 256 }
  0x25   :  { %p405_p2 = scmp.ne.s32.totalorder %s580_s3, %s404_s30  ;;  %p408_p3 = scmp.lt.u32.totalorder %s404_s30, %s580_s3 }
  0x27   :  { %p410_p4 = pnand %p408_p3, %p405_p2 }
  0x29   :  { %413 = shalt.err (!%p410_p4)
}
  0x2a   :  { %s414_s14 = scalar_lea.vmem %s45_s18, 256  ;;  %p419_p6 = scmp.lt.s32.totalorder %s45_s18, %s45_s18 }
  0x2b   :  { %p415_p5 = scmp.ne.s32.totalorder %s45_s18, %s414_s14  ;;  %p420_p7 = scmp.lt.s32.totalorder %s414_s14, %s414_s14 }
  0x2d   :  { %p421_p8 = por %p420_p7, %p419_p6 }
  0x2f   :  { %p422_p9 = pnand %p421_p8, %p415_p5 }
  0x31   :  { %425 = shalt.err (!%p422_p9)
}
  0x32   :  { %50 = dma.hbm_to_vmem [thread:$0]  %s580_s3, 256, %s45_s18, [#allocation6], %s455_s11, %s455_s11, %s456_s12  }
  0x33   :  { %448 = dma.done.wait [#allocation3], 128  }
  0x34   :  { %449 = vsyncadd [#allocation3], 4294967168 }
  0x35   :  { %450 = dma.done.wait [#allocation6], 448  }
  0x36   :  { %451 = vsyncadd [#allocation6], 4294966848  ;;  %v459_v0 = vmov 0.0   ;;  %vm460_vm0 = vmmov 0   ;;  %vm92_vm1 = vcmask 1040384   ;;  %v352_v1 = vld [vmem:[#allocation5] sm:$0xff]  }
  0x37   :  { %319 = vmatprep.subr.bf16.mxu0 %v459_v0  ;;  %323 = vmatprep.mubr.msk.bf16.mxu0 %vm460_vm0, %v459_v0  ;;  %v461_v2 = vmov 0   ;;  %v353_v4 = vld [vmem:[#allocation5 + $0x8] ss:$0 sps:$4 sm:$0x11]   ;;  %v67_v5 = vld [vmem:[#allocation2] sm:$0xff]  ;;  %vm88_vm2 = vcmask 138240  }
  0x38   :  { %327 = vmatprep.subr.bf16.mxu1 %v459_v0  ;;  %331 = vmatprep.mubr.msk.bf16.mxu1 %vm460_vm0, %v459_v0  ;;  %v94_v3 = vsel %vm92_vm1, 65535, %v461_v2  ;;  %v68_v7 = vpack.c.bf16 %v67_v5, %v67_v5  ;;  %v354_v8 = vld [vmem:[#allocation7] sm:$0xff]   ;;  %v355_v9 = vld [vmem:[#allocation7 + $0x8] sm:$0x7f]   ;;  %vm166_vm3 = vcmask 1046528   ;;  %vm162_vm4 = vcmask 244736  }
  0x39   :  { %320 = vmatpush3.bf16.msra.mxu0 %v352_v1  ;;  %v96_v6 = vand.u32 %v353_v4, %v94_v3  ;;  %328 = vmatpush3.bf16.msra.mxu1 %v354_v8  ;;  %v168_v10 = vsel %vm166_vm3, %v355_v9, 0  ;;  %v356_v11 = vld [vmem:[%s582_s5] sm:$0xff]   ;;  %v357_v20 = vld [vmem:[%s582_s5 + $0x8] sm:$0x7f]   ;;  %s462_s5 = smov [#allocation8]  }
  0x3a   :  { %321 = vmatprep.subr.bf16.mxu0 %v459_v0  ;;  %329 = vmatprep.subr.bf16.mxu1 %v459_v0  ;;  %v298_v12 = vld [vmem:[%s579_s2] ss:$0 sm:$0xff]  ;;  %v238_v21 = vsel %vm166_vm3, %v357_v20, 0 }
  0x3b   :  { %v302_v22 = vld [vmem:[%s581_s4] ss:$0 sm:$0xff]  ;;  %s288_s4 = sshll.u32 %s462_s5, 4  ;;  %s289_s4 = int_to_ptr.vmem [resolvable:$true] %s288_s4 }
  0x3c   :  { %v306_v30 = vld [vmem:[%s583_s6] ss:$0 sm:$0xff]  ;;  %s426_s22 = scalar_lea.vmem %s289_s4, 128  ;;  %p431_p11 = scmp.lt.s32.totalorder %s289_s4, %s289_s4 }
  0x3d   :  { %322 = vmatpush3.bf16.msra.mxu0 %v96_v6  ;;  %330 = vmatpush3.bf16.msra.mxu1 %v168_v10  ;;  %p427_p10 = scmp.ne.s32.totalorder %s289_s4, %s426_s22  ;;  %p432_p12 = scmp.lt.s32.totalorder %s426_s22, %s426_s22 }
  0x3e   :  { %335 = vmatprep.subr.bf16.mxu0 %v459_v0 }
  0x3f   :  { %p433_p13 = por %p432_p12, %p431_p11 }
  0x40   :  { %324 = vmatmul.mubr.msk.bf16.vlgmr.msra.gmra.mrb[0].mxu0 %vm88_vm2, %v68_v7 }
  0x41   :  { %339 = vmatprep.mubr.msk.bf16.mxu0 %vm460_vm0, %v459_v0  ;;  %336 = vmatpush3.bf16.msra.mxu0 %v356_v11  ;;  %p434_p0 = pnand %p433_p13, %p427_p10 }
  0x42   :  { %337 = vmatprep.subr.bf16.mxu0 %v459_v0 }
  0x45   :  { %338 = vmatpush3.bf16.msra.mxu0 %v238_v21 }
 0x113   :  { %v132_v13 = vpop.f32.mrb[0].mxu0 }
 0x114   :  { %v133_v14 = vadd.f32 %v298_v12, %v132_v13  ;;  %v325_v15 = vpop.f32.mrb[1].mxu0 }
 0x115   :  { %v135_v16 = vpop.f32.mrb[2].mxu0 }
 0x116   :  { %v138_v17 = vmax.f32 %v133_v14, 0.0  ;;  %v326_v18 = vpop.f32.mrb[3].mxu0 }
 0x118   :  { %v139_v19 = vpack.c.bf16 %v138_v17, %v138_v17 }
 0x11a   :  { %332 = vmatmul.mubr.msk.bf16.vlgmr.msra.gmra.mrb[0].mxu1 %vm162_vm4, %v139_v19 }
 0x1ed   :  { %v204_v23 = vpop.f32.mrb[0].mxu1 }
 0x1ee   :  { %v205_v24 = vadd.f32 %v302_v22, %v204_v23  ;;  %v333_v25 = vpop.f32.mrb[1].mxu1 }
 0x1ef   :  { %v207_v26 = vpop.f32.mrb[2].mxu1 }
 0x1f0   :  { %v210_v27 = vmax.f32 %v205_v24, 0.0  ;;  %v334_v28 = vpop.f32.mrb[3].mxu1 }
 0x1f2   :  { %v211_v29 = vpack.c.bf16 %v210_v27, %v210_v27 }
 0x1f4   :  { %340 = vmatmul.mubr.msk.bf16.vlgmr.msra.gmra.mrb[4].mxu0 %vm162_vm4, %v211_v29 }
 0x2c7   :  { %v274_v31 = vpop.f32.mrb[4].mxu0 }
 0x2c8   :  { %v275_v32 = vadd.f32 %v306_v30, %v274_v31  ;;  %v341_v33 = vpop.f32.mrb[5].mxu0 }
 0x2c9   :  { %v277_v34 = vpop.f32.mrb[6].mxu0 }
 0x2ca   :  { %358 = vtanh.f32 %v275_v32  ;;  %v342_v35 = vpop.f32.mrb[7].mxu0 }
 0x2d4   :  { %v359_v36 = vpop.eup %358 }
 0x2d5   :  { %281 = vst [vmem:[#allocation8] sm:$0xff] %v359_v36 }
 0x2d6   :  { %437 = shalt.err (!%p434_p0)
}
 0x2d7   :  { %s438_s24 = scalar_lea.hbm %s584_s7, 128 }
 0x2d8   :  { %p439_p1 = scmp.ne.s32.totalorder %s584_s7, %s438_s24  ;;  %p442_p2 = scmp.lt.u32.totalorder %s438_s24, %s584_s7 }
 0x2da   :  { %p444_p3 = pnand %p442_p2, %p439_p1 }
 0x2dc   :  { %447 = shalt.err (!%p444_p3)
}
 0x2dd   :  { %291 = dma.vmem_to_hbm [thread:$0]  %s289_s4, 128, %s584_s7, [#allocation4]  }
 0x2de   :  { %452 = dma.done.wait [#allocation4], 128  }
 0x2df   :  { %453 = vsyncadd [#allocation4], 4294967168 }
 0x2e0   :  { %295 = vsyncpa [#allocation3], 1 }
 0x2e1   :  { %296 = vsyncpa [#allocation6], 1 }
 0x2e2   :  { %297 = vsyncpa [#allocation4], 1 }

</bundles_post_ra>
